<compile_context>
chip_gen: v7x
topology: tpu7x:2x2x1
jax: 0.10.0
libtpu: 0.0.40
codegen_flags: <defaults>
</compile_context>

<pallas_src>
from collections import defaultdict

import jax
import jax.numpy as jnp
from jax.experimental import pallas as pl
from jax.experimental.pallas import tpu as pltpu


# ---------------------------------------------------------------------------
# Pallas kernel: lane-dense pass-through copy
# ---------------------------------------------------------------------------
def _copy_kernel(x_ref, o_ref):
    # Whole current tile: VMEM load, full-width VMEM store.
    o_ref[...] = x_ref[...]


# Default per-block byte budget: 2 MiB per block => (in + out) * double-buffer
# = 8 MiB, under every generation's default scoped VMEM (v5e 16 MiB,
# v6e 32 MiB, v7x 32 MiB scoped).
_DEFAULT_BLOCK_BYTES = 2 * 1024 * 1024
# Only split a fits-in-one-block input across two grid steps (for a v7x-style
# megacore) when the total traffic is big enough that each half's DMA time
# clearly exceeds ~2x the ~0.35 us per-grid-step overhead.
_SPLIT_MIN_BYTES = 2 * 1024 * 1024


def _hw_params():
    """Generation-dependent tuning: (max_block_bytes, vmem_limit_bytes, split)."""
    max_block = _DEFAULT_BLOCK_BYTES
    vmem_limit = None          # leave the compiler default for v5e/v6e
    allow_split = False        # single TensorCore: extra grid steps are pure overhead
    try:
        info = pltpu.get_tpu_info()
        version = str(getattr(info, "chip_version", "")).lower()
        if "7" in version:
            # v7x: 2 TCs/chip, ~3.2 TB/s HBM, 64 MiB physical VMEM.  Bigger
            # blocks amortize the ~0.35 us/step tax; explicit vmem limit keeps
            # the 4x-block double-buffer footprint compiling.
            max_block = 4 * 1024 * 1024
            vmem_limit = 40 * 1024 * 1024
            allow_split = True
    except Exception:
        # Conservative defaults are correct on every generation.
        pass
    return max_block, vmem_limit, allow_split


def pallas_passthrough(x: jax.Array) -> jax.Array:
    """Copies `x` through a Pallas TPU kernel (semantically the identity)."""
    orig_shape = x.shape
    dtype = x.dtype
    n = x.size
    if n == 0:
        return x

    max_block_bytes, vmem_limit, allow_split = _hw_params()

    # ---- lane-dense flatten + pad -------------------------------------------
    # Pad the flat view to a multiple of 128 so the trailing (lane) dim is
    # always 128-divisible: every store is an unmasked full-width vst.
    flat = x.reshape(-1)
    pad = (-n) % 128
    if pad:
        flat = jnp.pad(flat, (0, pad))
    n_padded = n + pad

    lanes = 128
    for cand in (1024, 512, 256):
        if n_padded % cand == 0:
            lanes = cand
            break
    rows = n_padded // lanes
    x2d = flat.reshape(rows, lanes)

    # ---- row tiling -----------------------------------------------------------
    itemsize = jnp.dtype(dtype).itemsize
    sublane = {4: 8, 2: 16, 1: 32}.get(itemsize, 8)  # dtype sublane packing
    total_bytes = rows * lanes * itemsize
    budget_rows = max(max_block_bytes // (lanes * itemsize), 1)

    if rows <= budget_rows:
        if allow_split and total_bytes >= _SPLIT_MIN_BYTES and rows >= 2 * sublane:
            # v7x-style megacore: two blocks so both TensorCores can stream HBM.
            half = (rows + 1) // 2
            tile_rows = max(((half + sublane - 1) // sublane) * sublane, sublane)
        else:
            # Single full-extent block: no extra grid-step overhead on
            # single-TC v5e/v6e (also valid when rows is not a multiple of 8).
            tile_rows = rows
    else:
        # Large input: biggest sublane-aligned tile under the VMEM byte budget.
        tile_rows = max((budget_rows // sublane) * sublane, sublane)

    grid = (pl.cdiv(rows, tile_rows),)

    compiler_kwargs = dict(dimension_semantics=("parallel",))
    if vmem_limit is not None:
        compiler_kwargs["vmem_limit_bytes"] = vmem_limit

    out2d = pl.pallas_call(
        _copy_kernel,
        out_shape=jax.ShapeDtypeStruct((rows, lanes), dtype),
        grid=grid,
        in_specs=[pl.BlockSpec((tile_rows, lanes), lambda i: (i, 0))],
        out_specs=pl.BlockSpec((tile_rows, lanes), lambda i: (i, 0)),
        compiler_params=pltpu.CompilerParams(**compiler_kwargs),
        cost_estimate=pl.CostEstimate(
            flops=0, transcendentals=0, bytes_accessed=2 * n_padded * itemsize
        ),
    )(x2d)

    out_flat = out2d.reshape(-1)
    if pad:
        out_flat = out_flat[:n]
    return out_flat.reshape(orig_shape)


# ---------------------------------------------------------------------------
# BaseModel re-implementation (JAX / Pallas)
# ---------------------------------------------------------------------------
class BaseModel:
    def __init__(self, losses=None):
        # Mirrors `self.losses = losses` + instantiation of loss fns.
        # No parameters are declared in __init__, so there is nothing to init.
        self.losses = dict(losses) if losses is not None else defaultdict()
        self.training = True

    def train(self):
        self.training = True
        return self

    def eval(self):
        self.training = False
        return self

    def prepare_input(self, data):
        # Identity in the reference.  The copy is elided entirely: no kernel
        # launch, no HBM round-trip.  (Use `pallas_passthrough(data)` here if a
        # TPU kernel launch is mandatory on this path.)
        return data

    def forward(self, data):
        if self.training:
            data = self.prepare_input(data)
            out = self.forward_train(data)
        else:
            out = self.forward_test(data)
        return out

    def forward_train(self, data):
        # Reference sets `loss = None` for each entry and returns the last.
        # TODO(synk): reference loss functions are never invoked (loss is
        # overwritten with None), so no loss compute is lowered to Pallas.
        out = defaultdict()
        loss = None
        for name, _loss_fn in self.losses.items():
            loss = None
        return loss

    def forward_test(self, data):
        # Reference returns None (pass).
        return None

    def forward_test_tta(self, data):
        return None

    __call__ = forward


# ---------------------------------------------------------------------------
# Demo / smoke test
# ---------------------------------------------------------------------------
if __name__ == "__main__":
    key = jax.random.PRNGKey(0)
    # NCHW, small shapes: batch=2, channels=4, spatial=16x16 (size % 128 == 0).
    x = jax.random.normal(key, (2, 4, 16, 16), dtype=jnp.float32)

    model = BaseModel(losses={"l1": None}).train()

    # Exercise the Pallas pass-through kernel (lane-dense, single-block path).
    y = jax.block_until_ready(pallas_passthrough(x))
    assert y.shape == x.shape and y.dtype == x.dtype
    assert bool(jnp.all(y == x))

    # Non-128-divisible size: exercises the pad-to-128 / slice-back path.
    key2 = jax.random.PRNGKey(1)
    z = jax.random.normal(key2, (3, 5, 7), dtype=jnp.float32)
    zc = jax.block_until_ready(pallas_passthrough(z))
    assert zc.shape == z.shape and bool(jnp.all(zc == z))

    # 0-d scalar input: robustness guard from the review.
    s = jnp.float32(3.5)
    sc = jax.block_until_ready(pallas_passthrough(s))
    assert sc.shape == () and bool(sc == s)

    # Full forward in training mode: prepare_input (identity) -> forward_train.
    out_train = model(x)
    assert out_train is None  # matches PyTorch semantics (loss set to None)

    # Eval mode forward: forward_test returns None, matching the reference.
    out_eval = model.eval()(x)
    assert out_eval is None

    print("KERNEL_OK")
</pallas_src>

<mosaic_0001>
module attributes {stable_mosaic.version = 11 : i64} {
  func.func @_copy_kernel(%arg0: i32, %arg1: memref<2x1024xf32, #tpu.memory_space<vmem>>, %arg2: memref<2x1024xf32, #tpu.memory_space<vmem>>) attributes {dimension_semantics = [#tpu.dimension_semantics<parallel>], iteration_bounds = array<i64: 1>, scalar_prefetch = 0 : i64, scratch_operands = 0 : i64, tpu.core_type = #tpu.core_type<tc>, window_params = [{transform_indices = @transform_0, window_bounds = array<i64: 2, 1024>}, {transform_indices = @transform_1, window_bounds = array<i64: 2, 1024>}]} {
    %c0 = arith.constant 0 : index
    %c0_0 = arith.constant 0 : index
    %0 = vector.load %arg1[%c0, %c0_0] : memref<2x1024xf32, #tpu.memory_space<vmem>>, vector<2x1024xf32>
    %c0_1 = arith.constant 0 : index
    %c0_2 = arith.constant 0 : index
    %1 = vector.load %arg2[%c0_1, %c0_2] : memref<2x1024xf32, #tpu.memory_space<vmem>>, vector<2x1024xf32>
    tpu.vector_store %arg2[%c0_1, %c0_2], %0 {strides = array<i32>} : memref<2x1024xf32, #tpu.memory_space<vmem>>, vector<2x1024xf32>,
    return
  }
  func.func @transform_0(%arg0: i32) -> (i32, i32) {
    %c0_i32 = arith.constant 0 : i32
    %c0_i32_0 = arith.constant 0 : i32
    return %arg0, %c0_i32 : i32, i32
  }
  func.func @transform_1(%arg0: i32) -> (i32, i32) {
    %c0_i32 = arith.constant 0 : i32
    %c0_i32_0 = arith.constant 0 : i32
    return %arg0, %c0_i32 : i32, i32
  }
}

</mosaic_0001>

<bundles_post_ra>
// kernel: tpu_custom_call.1
= control target key start
LH: loop header
LB: loop body
LE: loop exit
PB: predicated region body
PF: predicated region fallthrough
CT: control target
= control target key end

     0   :  { %6 = vsyncpa [#allocation3], 0  ;;  %s126_s0 = inlined_call_operand.hbm [shape: f32[2,1024], index: 0, kind: input, shape index: {}]   ;;  %s127_s1 = inlined_call_operand.hbm [shape: f32[2,1024], index: 1, kind: output, shape index: {}]  }
   0x1   :  { %7 = vsyncpa [#allocation4], 0  ;;  %s90_s6 = smov [#allocation2]   ;;  %s42_s10 = scalar_lea.hbm %s126_s0, 256 }
   0x2   :  { %s14_s7 = sshll.u32 %s90_s6, 4  ;;  %p43_p0 = scmp.ne.s32.totalorder %s126_s0, %s42_s10  ;;  %s15_s7 = int_to_ptr.vmem [resolvable:$true] %s14_s7 }
   0x3   :  { %p46_p1 = scmp.lt.u32.totalorder %s42_s10, %s126_s0 }
   0x5   :  { %p48_p2 = pnand %p46_p1, %p43_p0 }
   0x7   :  { %51 = shalt.err (!%p48_p2)
}
   0x8   :  { %s52_s15 = scalar_lea.vmem %s15_s7, 256  ;;  %p57_p4 = scmp.lt.s32.totalorder %s15_s7, %s15_s7 }
   0x9   :  { %p53_p3 = scmp.ne.s32.totalorder %s15_s7, %s52_s15  ;;  %p58_p5 = scmp.lt.s32.totalorder %s52_s15, %s52_s15 }
   0xb   :  { %p59_p6 = por %p58_p5, %p57_p4 }
   0xd   :  { %p60_p7 = pnand %p59_p6, %p53_p3 }
   0xf   :  { %63 = shalt.err (!%p60_p7)
}
  0x10   :  { %17 = dma.hbm_to_vmem [thread:$0]  %s126_s0, 256, %s15_s7, [#allocation3]  }
  0x11   :  { %86 = dma.done.wait [#allocation3], 256  }
  0x12   :  { %87 = vsyncadd [#allocation3], 4294967040  ;;  %s91_s18 = smov [#allocation5]   ;;  %v21_v0 = vld [vmem:[#allocation2] sm:$0xff]  ;;  %v22_v1 = vld [vmem:[#allocation2 + $0x8] sm:$0xff] }
  0x13   :  { %s31_s19 = sshll.u32 %s91_s18, 4  ;;  %23 = vst [vmem:[#allocation5] sm:$0xff] %v21_v0  ;;  %24 = vst [vmem:[#allocation5 + $0x8] sm:$0xff] %v22_v1  ;;  %s32_s19 = int_to_ptr.vmem [resolvable:$true] %s31_s19 }
  0x14   :  { %s64_s20 = scalar_lea.vmem %s32_s19, 256  ;;  %p69_p9 = scmp.lt.s32.totalorder %s32_s19, %s32_s19 }
  0x15   :  { %p65_p8 = scmp.ne.s32.totalorder %s32_s19, %s64_s20  ;;  %p70_p10 = scmp.lt.s32.totalorder %s64_s20, %s64_s20 }
  0x17   :  { %p71_p11 = por %p70_p10, %p69_p9 }
  0x19   :  { %p72_p12 = pnand %p71_p11, %p65_p8 }
  0x1b   :  { %75 = shalt.err (!%p72_p12)
}
  0x1c   :  { %s76_s0 = scalar_lea.hbm %s127_s1, 256 }
  0x1d   :  { %p77_p13 = scmp.ne.s32.totalorder %s127_s1, %s76_s0  ;;  %p80_p0 = scmp.lt.u32.totalorder %s76_s0, %s127_s1 }
  0x1f   :  { %p82_p1 = pnand %p80_p0, %p77_p13 }
  0x21   :  { %85 = shalt.err (!%p82_p1)
}
  0x22   :  { %34 = dma.vmem_to_hbm [thread:$0]  %s32_s19, 256, %s127_s1, [#allocation4]  }
  0x23   :  { %88 = dma.done.wait [#allocation4], 256  }
  0x24   :  { %89 = vsyncadd [#allocation4], 4294967040 }
  0x25   :  { %38 = vsyncpa [#allocation3], 1 }
  0x26   :  { %39 = vsyncpa [#allocation4], 1 }

</bundles_post_ra>
